<compile_context>
chip_gen: v6e
topology: v6e:2x2x1
jax: 0.10.0
libtpu: 0.0.40
codegen_flags: <defaults>
</compile_context>

<pallas_src>
import functools

import jax
import jax.numpy as jnp
from jax.experimental import pallas as pl
from jax.experimental.pallas import tpu as pltpu

# Logical (PyTorch) dims.
IN_DIM = 10 * 4 * 5   # 200
H1 = 400
H2 = 200
OUT = 4

# Lane-padded hidden/output dims used by the kernel.
H1_PAD = 512
H2_PAD = 256
OUT_PAD = 8           # output block last dim == full array dim (legal), tiny writeback


def _round_up(a, m):
    return ((a + m - 1) // m) * m


def bcp_kernel(x_ref, w1_ref, b1_ref, w2_ref, b2_ref, w3_ref, b3_ref, o_ref,
               *, num_splits):
    """Fused 3-layer MLP on one (TB, 200) batch tile.

    num_splits=2 interleaves two independent half-tiles so the VPU epilogue
    (bias + ReLU + bf16 pack) of one half overlaps the next half's MXU matmul.
    """
    w1 = w1_ref[...]
    w2 = w2_ref[...]
    w3 = w3_ref[...]
    b1 = b1_ref[...]
    b2 = b2_ref[...]
    b3 = b3_ref[...]

    tb = x_ref.shape[0]
    rows = tb // num_splits
    for s in range(num_splits):
        sl = pl.ds(s * rows, rows)
        x = x_ref[sl, :].astype(jnp.bfloat16)                              # (rows, 200)
        h1 = jnp.dot(x, w1, preferred_element_type=jnp.float32) + b1       # (rows, 512) f32
        h1 = jnp.maximum(h1, 0.0).astype(jnp.bfloat16)
        h2 = jnp.dot(h1, w2, preferred_element_type=jnp.float32) + b2      # (rows, 256) f32
        h2 = jnp.maximum(h2, 0.0).astype(jnp.bfloat16)
        h3 = jnp.dot(h2, w3, preferred_element_type=jnp.float32) + b3      # (rows, 8) f32
        o_ref[sl, :] = jnp.maximum(h3, 0.0)


def bcp_forward(x, padded_params, *, tile_b=2048):
    """x: (B, 200) float32; padded_params: output of prepare_params(). Returns (B, 4) f32."""
    p = padded_params
    x = x.astype(jnp.float32)
    B = x.shape[0]

    # Batch tile: multiple of 8 (sublane), capped at tile_b.
    TB = min(_round_up(tile_b, 8), _round_up(max(B, 1), 8))
    # Guarantee >= 2 grid steps whenever there is enough work, so v7x's two
    # TensorCores can both run (no-op on v5e/v6e).
    if B > 8 and pl.cdiv(B, TB) < 2:
        TB = _round_up(pl.cdiv(B, 2), 8)
    grid = (pl.cdiv(B, TB),)
    # Two-way intra-tile split only when the halves stay sublane-aligned and big
    # enough for the MXU/VPU overlap to matter.
    num_splits = 2 if (TB >= 256 and TB % 16 == 0) else 1

    # VMEM accounting (bytes): double-buffered x/out tiles, double-buffered (tiny)
    # resident weights, f32/bf16 intermediates for one tile, plus 1.5x slack.
    weight_bytes = (2 * (IN_DIM * H1_PAD + H1_PAD * H2_PAD + H2_PAD * OUT_PAD) * 2
                    + 2 * (H1_PAD + H2_PAD + OUT_PAD) * 4)
    est = (2 * TB * IN_DIM * 4          # x tile, double-buffered
           + 2 * TB * OUT_PAD * 4       # out tile, double-buffered
           + weight_bytes
           + TB * 6400)                 # h1/h2 f32 + bf16 copies + misc temporaries
    vmem_limit = int(min(max(est * 3 // 2, 32 * 1024 * 1024), 56 * 1024 * 1024))

    flops = 2 * B * (IN_DIM * H1_PAD + H1_PAD * H2_PAD + H2_PAD * OUT_PAD)
    bytes_accessed = B * IN_DIM * 4 + B * OUT_PAD * 4 + weight_bytes // 2

    resident = lambda shape: pl.BlockSpec(shape, lambda i: (0, 0))  # VMEM-resident all steps

    out_padded = pl.pallas_call(
        functools.partial(bcp_kernel, num_splits=num_splits),
        out_shape=jax.ShapeDtypeStruct((B, OUT_PAD), jnp.float32),
        grid=grid,
        in_specs=[
            pl.BlockSpec((TB, IN_DIM), lambda i: (i, 0)),   # x: tiled over batch, raw f32
            resident((IN_DIM, H1_PAD)),
            resident((1, H1_PAD)),
            resident((H1_PAD, H2_PAD)),
            resident((1, H2_PAD)),
            resident((H2_PAD, OUT_PAD)),
            resident((1, OUT_PAD)),
        ],
        out_specs=pl.BlockSpec((TB, OUT_PAD), lambda i: (i, 0)),
        compiler_params=pltpu.CompilerParams(
            dimension_semantics=("parallel",),
            vmem_limit_bytes=vmem_limit,
        ),
        cost_estimate=pl.CostEstimate(
            flops=int(flops), transcendentals=0, bytes_accessed=int(bytes_accessed)),
    )(x, p["w1"], p["b1"], p["w2"], p["b2"], p["w3"], p["b3"])

    return out_padded[:, :OUT]


def init_params(key):
    """PyTorch nn.Linear-style init (U[-1/sqrt(fan_in), 1/sqrt(fan_in)]).

    Returns *logical* (unpadded) f32 params; weights stored as (in, out) so y = x @ W + b.
    """
    ks = jax.random.split(key, 6)

    def lin(kw, kb, fan_in, fan_out):
        bound = 1.0 / jnp.sqrt(float(fan_in))
        w = jax.random.uniform(kw, (fan_in, fan_out), jnp.float32, -bound, bound)
        b = jax.random.uniform(kb, (1, fan_out), jnp.float32, -bound, bound)
        return w, b

    w1, b1 = lin(ks[0], ks[1], IN_DIM, H1)
    w2, b2 = lin(ks[2], ks[3], H1, H2)
    w3, b3 = lin(ks[4], ks[5], H2, OUT)
    return {"w1": w1, "b1": b1, "w2": w2, "b2": b2, "w3": w3, "b3": b3}


def prepare_params(p):
    """One-time prep: zero-pad hidden/output dims to lane-friendly sizes; weights -> bf16.

    Padded weight rows/cols and bias entries are zero, so activations in the padded
    columns are ReLU(0) = 0 and numerics of the logical slice are unchanged.
    """
    def pad_w(w, rows, cols):
        w = jnp.pad(w, ((0, rows - w.shape[0]), (0, cols - w.shape[1])))
        return w.astype(jnp.bfloat16)

    def pad_b(b, cols):
        return jnp.pad(b, ((0, 0), (0, cols - b.shape[1]))).astype(jnp.float32)

    return {
        "w1": pad_w(p["w1"], IN_DIM, H1_PAD), "b1": pad_b(p["b1"], H1_PAD),
        "w2": pad_w(p["w2"], H1_PAD, H2_PAD), "b2": pad_b(p["b2"], H2_PAD),
        "w3": pad_w(p["w3"], H2_PAD, OUT_PAD), "b3": pad_b(p["b3"], OUT_PAD),
    }


def bcp_ref(x, p):
    """Plain-JAX f32 reference for correctness checks."""
    h = jnp.maximum(x @ p["w1"] + p["b1"], 0.0)
    h = jnp.maximum(h @ p["w2"] + p["b2"], 0.0)
    h = jnp.maximum(h @ p["w3"] + p["b3"], 0.0)
    return h


if __name__ == "__main__":
    key = jax.random.PRNGKey(0)
    kx, kp = jax.random.split(key)
    params = init_params(kp)
    padded = prepare_params(params)

    def check(x, out, tag):
        ref = bcp_ref(x, params)
        assert out.shape == ref.shape, f"{tag}: shape {out.shape} vs {ref.shape}"
        assert jnp.allclose(out, ref, atol=5e-2, rtol=5e-2), f"mismatch vs reference ({tag})"

    # 1) Tiny batch: single grid step, partial block (B=2 < TB=8).
    B = 2
    x = jax.random.normal(kx, (B, IN_DIM), jnp.float32)
    out = jax.block_until_ready(bcp_forward(x, padded))
    check(x, out, "B=2")

    # 2) Multi-step grid with a partial last block (B=20, TB=8 -> grid=3).
    B2 = 20
    x2 = jax.random.normal(jax.random.PRNGKey(1), (B2, IN_DIM), jnp.float32)
    out2 = jax.block_until_ready(bcp_forward(x2, padded, tile_b=8))
    check(x2, out2, "B=20 tiled")

    # 3) Larger batch: exercises the >=2-step split (TB=256, grid=2) and the
    #    two-way intra-tile MXU/VPU overlap path.
    B3 = 512
    x3 = jax.random.normal(jax.random.PRNGKey(2), (B3, IN_DIM), jnp.float32)
    out3 = jax.block_until_ready(bcp_forward(x3, padded))
    check(x3, out3, "B=512")

    print("KERNEL_OK")
</pallas_src>

<mosaic_0001>
module attributes {stable_mosaic.version = 11 : i64} {
  func.func @bcp_kernel(%arg0: i32, %arg1: memref<8x200xf32, #tpu.memory_space<vmem>>, %arg2: memref<200x512xbf16, #tpu.memory_space<vmem>>, %arg3: memref<1x512xf32, #tpu.memory_space<vmem>>, %arg4: memref<512x256xbf16, #tpu.memory_space<vmem>>, %arg5: memref<1x256xf32, #tpu.memory_space<vmem>>, %arg6: memref<256x8xbf16, #tpu.memory_space<vmem>>, %arg7: memref<1x8xf32, #tpu.memory_space<vmem>>, %arg8: memref<8x8xf32, #tpu.memory_space<vmem>>) attributes {dimension_semantics = [#tpu.dimension_semantics<parallel>], iteration_bounds = array<i64: 1>, scalar_prefetch = 0 : i64, scratch_operands = 0 : i64, tpu.core_type = #tpu.core_type<tc>, window_params = [{transform_indices = @transform_0, window_bounds = array<i64: 8, 200>}, {pipeline_mode = #tpu.pipeline_mode<synchronous>, transform_indices = @transform_1, window_bounds = array<i64: 200, 512>}, {pipeline_mode = #tpu.pipeline_mode<synchronous>, transform_indices = @transform_2, window_bounds = array<i64: 1, 512>}, {pipeline_mode = #tpu.pipeline_mode<synchronous>, transform_indices = @transform_3, window_bounds = array<i64: 512, 256>}, {pipeline_mode = #tpu.pipeline_mode<synchronous>, transform_indices = @transform_4, window_bounds = array<i64: 1, 256>}, {pipeline_mode = #tpu.pipeline_mode<synchronous>, transform_indices = @transform_5, window_bounds = array<i64: 256, 8>}, {pipeline_mode = #tpu.pipeline_mode<synchronous>, transform_indices = @transform_6, window_bounds = array<i64: 1, 8>}, {transform_indices = @transform_7, window_bounds = array<i64: 8, 8>}]} {
    %c0 = arith.constant 0 : index
    %c0_0 = arith.constant 0 : index
    %0 = vector.load %arg2[%c0, %c0_0] : memref<200x512xbf16, #tpu.memory_space<vmem>>, vector<200x512xbf16>
    %c0_1 = arith.constant 0 : index
    %c0_2 = arith.constant 0 : index
    %1 = vector.load %arg4[%c0_1, %c0_2] : memref<512x256xbf16, #tpu.memory_space<vmem>>, vector<512x256xbf16>
    %c0_3 = arith.constant 0 : index
    %c0_4 = arith.constant 0 : index
    %2 = vector.load %arg6[%c0_3, %c0_4] : memref<256x8xbf16, #tpu.memory_space<vmem>>, vector<256x8xbf16>
    %c0_5 = arith.constant 0 : index
    %c0_6 = arith.constant 0 : index
    %3 = vector.load %arg3[%c0_5, %c0_6] : memref<1x512xf32, #tpu.memory_space<vmem>>, vector<1x512xf32>
    %c0_7 = arith.constant 0 : index
    %c0_8 = arith.constant 0 : index
    %4 = vector.load %arg5[%c0_7, %c0_8] : memref<1x256xf32, #tpu.memory_space<vmem>>, vector<1x256xf32>
    %c0_9 = arith.constant 0 : index
    %c0_10 = arith.constant 0 : index
    %5 = vector.load %arg7[%c0_9, %c0_10] : memref<1x8xf32, #tpu.memory_space<vmem>>, vector<1x8xf32>
    %c0_11 = arith.constant 0 : index
    %c0_12 = arith.constant 0 : index
    %6 = vector.load %arg1[%c0_11, %c0_12] : memref<8x200xf32, #tpu.memory_space<vmem>>, vector<8x200xf32>
    %7 = arith.truncf %6 : vector<8x200xf32> to vector<8x200xbf16>
    %cst = arith.constant dense<0.000000e+00> : vector<8x512xf32>
    %8 = tpu.matmul %7, %0, %cst {dimension_numbers = #tpu.dot_dimension_numbers<[1], [0], [0], [1], [0, 0, 1, 1], [], []>} : vector<8x200xbf16>, vector<200x512xbf16>, vector<8x512xf32> -> vector<8x512xf32>
    %9 = vector.broadcast %3 : vector<1x512xf32> to vector<8x512xf32>
    %10 = arith.addf %8, %9 : vector<8x512xf32>
    %cst_13 = arith.constant 0.000000e+00 : f32
    %11 = vector.broadcast %cst_13 : f32 to vector<8x512xf32>
    %12 = arith.maximumf %10, %11 : vector<8x512xf32>
    %13 = arith.truncf %12 : vector<8x512xf32> to vector<8x512xbf16>
    %cst_14 = arith.constant dense<0.000000e+00> : vector<8x256xf32>
    %14 = tpu.matmul %13, %1, %cst_14 {dimension_numbers = #tpu.dot_dimension_numbers<[1], [0], [0], [1], [0, 0, 1, 1], [], []>} : vector<8x512xbf16>, vector<512x256xbf16>, vector<8x256xf32> -> vector<8x256xf32>
    %15 = vector.broadcast %4 : vector<1x256xf32> to vector<8x256xf32>
    %16 = arith.addf %14, %15 : vector<8x256xf32>
    %cst_15 = arith.constant 0.000000e+00 : f32
    %17 = vector.broadcast %cst_15 : f32 to vector<8x256xf32>
    %18 = arith.maximumf %16, %17 : vector<8x256xf32>
    %19 = arith.truncf %18 : vector<8x256xf32> to vector<8x256xbf16>
    %cst_16 = arith.constant dense<0.000000e+00> : vector<8x8xf32>
    %20 = tpu.matmul %19, %2, %cst_16 {dimension_numbers = #tpu.dot_dimension_numbers<[1], [0], [0], [1], [0, 0, 1, 1], [], []>} : vector<8x256xbf16>, vector<256x8xbf16>, vector<8x8xf32> -> vector<8x8xf32>
    %21 = vector.broadcast %5 : vector<1x8xf32> to vector<8x8xf32>
    %22 = arith.addf %20, %21 : vector<8x8xf32>
    %cst_17 = arith.constant 0.000000e+00 : f32
    %23 = vector.broadcast %cst_17 : f32 to vector<8x8xf32>
    %24 = arith.maximumf %22, %23 : vector<8x8xf32>
    %c0_18 = arith.constant 0 : index
    %c0_19 = arith.constant 0 : index
    %25 = vector.load %arg8[%c0_18, %c0_19] : memref<8x8xf32, #tpu.memory_space<vmem>>, vector<8x8xf32>
    tpu.vector_store %arg8[%c0_18, %c0_19], %24 {strides = array<i32>} : memref<8x8xf32, #tpu.memory_space<vmem>>, vector<8x8xf32>,
    return
  }
  func.func @transform_0(%arg0: i32) -> (i32, i32) {
    %c0_i32 = arith.constant 0 : i32
    %c0_i32_0 = arith.constant 0 : i32
    return %arg0, %c0_i32 : i32, i32
  }
  func.func @transform_1(%arg0: i32) -> (i32, i32) {
    %c0_i32 = arith.constant 0 : i32
    %c0_i32_0 = arith.constant 0 : i32
    %c0_i32_1 = arith.constant 0 : i32
    return %c0_i32, %c0_i32_0 : i32, i32
  }
  func.func @transform_2(%arg0: i32) -> (i32, i32) {
    %c0_i32 = arith.constant 0 : i32
    %c0_i32_0 = arith.constant 0 : i32
    %c0_i32_1 = arith.constant 0 : i32
    return %c0_i32, %c0_i32_0 : i32, i32
  }
  func.func @transform_3(%arg0: i32) -> (i32, i32) {
    %c0_i32 = arith.constant 0 : i32
    %c0_i32_0 = arith.constant 0 : i32
    %c0_i32_1 = arith.constant 0 : i32
    return %c0_i32, %c0_i32_0 : i32, i32
  }
  func.func @transform_4(%arg0: i32) -> (i32, i32) {
    %c0_i32 = arith.constant 0 : i32
    %c0_i32_0 = arith.constant 0 : i32
    %c0_i32_1 = arith.constant 0 : i32
    return %c0_i32, %c0_i32_0 : i32, i32
  }
  func.func @transform_5(%arg0: i32) -> (i32, i32) {
    %c0_i32 = arith.constant 0 : i32
    %c0_i32_0 = arith.constant 0 : i32
    %c0_i32_1 = arith.constant 0 : i32
    return %c0_i32, %c0_i32_0 : i32, i32
  }
  func.func @transform_6(%arg0: i32) -> (i32, i32) {
    %c0_i32 = arith.constant 0 : i32
    %c0_i32_0 = arith.constant 0 : i32
    %c0_i32_1 = arith.constant 0 : i32
    return %c0_i32, %c0_i32_0 : i32, i32
  }
  func.func @transform_7(%arg0: i32) -> (i32, i32) {
    %c0_i32 = arith.constant 0 : i32
    %c0_i32_0 = arith.constant 0 : i32
    return %arg0, %c0_i32 : i32, i32
  }
}

</mosaic_0001>

<bundles_post_ra>
// kernel: tpu_custom_call.1
= control target key start
LH: loop header
LB: loop body
LE: loop exit
PB: predicated region body
PF: predicated region fallthrough
CT: control target
= control target key end

     0   :  { %12 = vsyncpa [#allocation3], 0  ;;  %s1751_s0 = inlined_call_operand.vmem [shape: f32[2,200], index: 0, kind: input, shape index: {}]   ;;  %s1752_s1 = inlined_call_operand.hbm [shape: bf16[200,512], index: 1, kind: input, shape index: {}]   ;;  %s1753_s2 = inlined_call_operand.vmem [shape: f32[1,512], index: 2, kind: input, shape index: {}]   ;;  %s1754_s3 = inlined_call_operand.hbm [shape: bf16[512,256], index: 3, kind: input, shape index: {}]   ;;  %s1755_s4 = inlined_call_operand.vmem [shape: f32[1,256], index: 4, kind: input, shape index: {}]   ;;  %s1756_s5 = inlined_call_operand.vmem [shape: bf16[256,8], index: 5, kind: input, shape index: {}]   ;;  %s1757_s6 = inlined_call_operand.vmem [shape: f32[1,8], index: 6, kind: input, shape index: {}]   ;;  %s1758_s7 = inlined_call_operand.hbm [shape: f32[2,8], index: 7, kind: output, shape index: {}]  }
   0x1   :  { %13 = vsyncpa [#allocation6], 0 }
   0x2   :  { %14 = vsyncpa [#allocation4], 0  ;;  %s1620_s24 = smov [#allocation2]  }
   0x3   :  { %s22_s25 = sshll.u32 %s1620_s24, 4  ;;  %s23_s25 = int_to_ptr.vmem [resolvable:$true] %s22_s25 }
   0x4   :  { %s1562_s26 = scalar_lea.vmem %s23_s25, 6400  ;;  %p1567_p1 = scmp.lt.s32.totalorder %s23_s25, %s23_s25 }
   0x5   :  { %p1563_p0 = scmp.ne.s32.totalorder %s23_s25, %s1562_s26  ;;  %p1568_p2 = scmp.lt.s32.totalorder %s1562_s26, %s1562_s26 }
   0x7   :  { %p1569_p3 = por %p1568_p2, %p1567_p1 }
   0x9   :  { %p1570_p4 = pnand %p1569_p3, %p1563_p0 }
   0xb   :  { %1573 = shalt.err (!%p1570_p4)
}
   0xc   :  { %s1621_s27 = smov 256   ;;  %s1622_s28 = smov 16  }
   0xd   :  { %28 = dma.hbm_to_vmem [thread:$0]  %s1752_s1, 6400, %s23_s25, [#allocation3], %s1621_s27, %s1621_s27, %s1622_s28  }
   0xe   :  { %s1623_s8 = smov [#allocation5]  }
   0xf   :  { %s36_s9 = sshll.u32 %s1623_s8, 4  ;;  %s37_s9 = int_to_ptr.vmem [resolvable:$true] %s36_s9 }
  0x10   :  { %s1582_s10 = scalar_lea.vmem %s37_s9, 8192  ;;  %p1587_p6 = scmp.lt.s32.totalorder %s37_s9, %s37_s9 }
  0x11   :  { %p1583_p5 = scmp.ne.s32.totalorder %s37_s9, %s1582_s10  ;;  %p1588_p7 = scmp.lt.s32.totalorder %s1582_s10, %s1582_s10 }
  0x13   :  { %p1589_p8 = por %p1588_p7, %p1587_p6 }
  0x15   :  { %p1590_p9 = pnand %p1589_p8, %p1583_p5 }
  0x17   :  { %1593 = shalt.err (!%p1590_p9)
}
  0x18   :  { %s1624_s11 = smov 128   ;;  %s1625_s12 = smov 8  }
  0x19   :  { %42 = dma.hbm_to_vmem [thread:$0]  %s1754_s3, 8192, %s37_s9, [#allocation6], %s1624_s11, %s1624_s11, %s1625_s12  }
  0x1a   :  { %1614 = dma.done.wait [#allocation3], 6400  }
  0x1b   :  { %1615 = vsyncadd [#allocation3], 4294960896 }
  0x1c   :  { %1616 = dma.done.wait [#allocation6], 8192  }
  0x1d   :  { %1617 = vsyncadd [#allocation6], 4294959104  ;;  %v1362_v0 = vld [vmem:[#allocation2 + $0xe4] ss:$16 sps:$4 sm:$0xff]   ;;  %v1364_v1 = vld [vmem:[#allocation2 + $0xec] ss:$16 sps:$4 sm:$0xff]   ;;  %v218_v31 = vlaneseq }
  0x1e   :  { %523 = vmatprep.subr.bf16.mxu0 %v1362_v0  ;;  %v1366_v2 = vld [vmem:[#allocation2 + $0xe0] ss:$16 sps:$4 sm:$0xff]   ;;  %v1367_v3 = vld [vmem:[#allocation2 + $0xe8] ss:$16 sps:$4 sm:$0xff]   ;;  %564 = vmatprep.subr.bf16.mxu1 %v1364_v1  ;;  %v1368_v4 = vld [vmem:[#allocation2 + $0xc4] ss:$16 sps:$4 sm:$0xff]  }
  0x1f   :  { %524 = vmatpush1.bf16.msra.mxu0 %v1366_v2  ;;  %565 = vmatpush1.bf16.msra.mxu1 %v1367_v3  ;;  %v1370_v5 = vld [vmem:[#allocation2 + $0xcc] ss:$16 sps:$4 sm:$0xff]   ;;  %v1372_v6 = vld [vmem:[#allocation2 + $0xc0] ss:$16 sps:$4 sm:$0xff]   ;;  %v1373_v7 = vld [vmem:[#allocation2 + $0xc8] ss:$16 sps:$4 sm:$0xff]  }
  0x20   :  { %525 = vmatprep.subr.bf16.mxu0 %v1368_v4  ;;  %566 = vmatprep.subr.bf16.mxu1 %v1370_v5  ;;  %v1374_v8 = vld [vmem:[#allocation2 + $0xa4] ss:$16 sps:$4 sm:$0xff]   ;;  %v1376_v9 = vld [vmem:[#allocation2 + $0xac] ss:$16 sps:$4 sm:$0xff]   ;;  %v1378_v10 = vld [vmem:[#allocation2 + $0xa0] ss:$16 sps:$4 sm:$0xff]  }
  0x21   :  { %v1379_v11 = vld [vmem:[#allocation2 + $0xa8] ss:$16 sps:$4 sm:$0xff]   ;;  %v1380_v12 = vld [vmem:[#allocation2 + $0x84] ss:$16 sps:$4 sm:$0xff]   ;;  %v1382_v13 = vld [vmem:[#allocation2 + $0x8c] ss:$16 sps:$4 sm:$0xff]  }
  0x22   :  { %v1384_v14 = vld [vmem:[#allocation2 + $0x80] ss:$16 sps:$4 sm:$0xff]   ;;  %v1385_v15 = vld [vmem:[#allocation2 + $0x88] ss:$16 sps:$4 sm:$0xff]   ;;  %v1386_v16 = vld [vmem:[#allocation2 + $0x64] ss:$16 sps:$4 sm:$0xff]  }
  0x23   :  { %526 = vmatpush1.bf16.msra.mxu0 %v1372_v6  ;;  %567 = vmatpush1.bf16.msra.mxu1 %v1373_v7  ;;  %v1388_v17 = vld [vmem:[#allocation2 + $0x6c] ss:$16 sps:$4 sm:$0xff]   ;;  %v1390_v18 = vld [vmem:[#allocation2 + $0x60] ss:$16 sps:$4 sm:$0xff]   ;;  %v1391_v19 = vld [vmem:[#allocation2 + $0x68] ss:$16 sps:$4 sm:$0xff]  }
  0x24   :  { %527 = vmatprep.subr.bf16.mxu0 %v1374_v8  ;;  %568 = vmatprep.subr.bf16.mxu1 %v1376_v9  ;;  %v1392_v20 = vld [vmem:[#allocation2 + $0x44] ss:$16 sps:$4 sm:$0xff]   ;;  %v1394_v21 = vld [vmem:[#allocation2 + $0x4c] ss:$16 sps:$4 sm:$0xff]   ;;  %v1396_v22 = vld [vmem:[#allocation2 + $0x40] ss:$16 sps:$4 sm:$0xff]  }
  0x25   :  { %v1397_v23 = vld [vmem:[#allocation2 + $0x48] ss:$16 sps:$4 sm:$0xff]   ;;  %v1398_v24 = vld [vmem:[#allocation2 + $0x24] ss:$16 sps:$4 sm:$0xff]   ;;  %v1400_v25 = vld [vmem:[#allocation2 + $0x2c] ss:$16 sps:$4 sm:$0xff]  }
  0x26   :  { %v1402_v26 = vld [vmem:[#allocation2 + $0x20] ss:$16 sps:$4 sm:$0xff]   ;;  %v1403_v27 = vld [vmem:[#allocation2 + $0x28] ss:$16 sps:$4 sm:$0xff]   ;;  %v1404_v28 = vld [vmem:[#allocation2 + $0x4] ss:$16 sps:$4 sm:$0xff]  }
  0x27   :  { %528 = vmatpush1.bf16.msra.mxu0 %v1378_v10  ;;  %569 = vmatpush1.bf16.msra.mxu1 %v1379_v11  ;;  %v1406_v29 = vld [vmem:[#allocation2 + $0xc] ss:$16 sps:$4 sm:$0xff]   ;;  %v104_v30 = vld [vmem:[#allocation2 + $0x180] sm:$0xff]  ;;  %v1409_v34 = vld [vmem:[#allocation2 + $0x8] ss:$16 sps:$4 sm:$0xff]   ;;  %v1675_v37 = vshrl.u32 %v218_v31, 7 }
  0x28   :  { %529 = vmatprep.subr.bf16.mxu0 %v1380_v12  ;;  %570 = vmatprep.subr.bf16.mxu1 %v1382_v13  ;;  %v105_v32 = vld [vmem:[#allocation2 + $0x188] sm:$0xff]  ;;  %v1408_v33 = vld [vmem:[#allocation2] ss:$16 sps:$4 sm:$0xff]   ;;  %v1241_v35 = vcombine.low %v104_v30, %v104_v30  ;;  %v1242_v38 = vcombine.high %v104_v30, %v104_v30  ;;  %vm510_vm0 = vcmask 1043456   ;;  %v1414_v42 = vld [vmem:[#allocation2 + $0x164] ss:$16 sps:$4 sm:$0xff]  }
  0x29   :  { %v1243_v36 = vcombine.low %v105_v32, %v105_v32  ;;  %v1244_v39 = vcombine.high %v105_v32, %v105_v32  ;;  %v1416_v43 = vld [vmem:[#allocation2 + $0x16c] ss:$16 sps:$4 sm:$0xff]   ;;  %v1552_v44 = vld.sshfl [vmem:[%s1751_s0] sm:$0xff pattern:$0x76325410]  ;;  %vm506_vm1 = vcmask 588800  }
  0x2a   :  { %v512_v40 = vsel %vm510_vm0, %v1241_v35, 0  ;;  %v1553_v45 = vld.sshfl [vmem:[%s1751_s0 + $0x8] sm:$0xff pattern:$0x76325410]  ;;  %v1418_v46 = vld [vmem:[#allocation2 + $0x160] ss:$16 sps:$4 sm:$0xff]  }
  0x2b   :  { %530 = vmatpush1.bf16.msra.mxu0 %v1384_v14  ;;  %571 = vmatpush1.bf16.msra.mxu1 %v1385_v15  ;;  %v518_v41 = vsel %vm510_vm0, %v1243_v36, 0  ;;  %v1419_v47 = vld [vmem:[#allocation2 + $0x168] ss:$16 sps:$4 sm:$0xff]   ;;  %v1420_v48 = vld [vmem:[#allocation2 + $0x144] ss:$16 sps:$4 sm:$0xff]   ;;  %v230_v50 = vcombine.high %v1552_v44, %v1553_v45  ;;  %v229_v61 = vcombine.low %v1552_v44, %v1553_v45  ;;  %vm1173_vm2 = vcmask 64512  }
  0x2c   :  { %531 = vmatprep.subr.bf16.mxu0 %v1386_v16  ;;  %572 = vmatprep.subr.bf16.mxu1 %v1388_v17  ;;  %v1422_v49 = vld [vmem:[#allocation2 + $0x14c] ss:$16 sps:$4 sm:$0xff]   ;;  %v1424_v51 = vld [vmem:[#allocation2 + $0x140] ss:$16 sps:$4 sm:$0xff]   ;;  %v1425_v52 = vld [vmem:[#allocation2 + $0x148] ss:$16 sps:$4 sm:$0xff]  }
  0x2d   :  { %v234_v53 = vpack.c.bf16 %v230_v50, %v230_v50  ;;  %v1426_v54 = vld [vmem:[#allocation2 + $0x124] ss:$16 sps:$4 sm:$0xff]   ;;  %v1428_v55 = vld [vmem:[#allocation2 + $0x12c] ss:$16 sps:$4 sm:$0xff]   ;;  %v1430_v56 = vld [vmem:[#allocation2 + $0x120] ss:$16 sps:$4 sm:$0xff]   ;;  %v233_v1 = vpack.c.bf16 %v229_v61, %v229_v61 }
  0x2e   :  { %v1431_v57 = vld [vmem:[#allocation2 + $0x128] ss:$16 sps:$4 sm:$0xff]   ;;  %v1432_v58 = vld [vmem:[#allocation2 + $0x104] ss:$16 sps:$4 sm:$0xff]   ;;  %v1434_v59 = vld [vmem:[#allocation2 + $0x10c] ss:$16 sps:$4 sm:$0xff]  }
  0x2f   :  { %532 = vmatpush1.bf16.msra.mxu0 %v1390_v18  ;;  %573 = vmatpush1.bf16.msra.mxu1 %v1391_v19  ;;  %v1436_v60 = vld [vmem:[#allocation2 + $0x100] ss:$16 sps:$4 sm:$0xff]   ;;  %v1437_v62 = vld [vmem:[#allocation2 + $0x108] ss:$16 sps:$4 sm:$0xff]   ;;  %v1442_v63 = vld [vmem:[#allocation5 + $0x74] ss:$8 sps:$4 sm:$0xff]  }
  0x30   :  { %533 = vmatprep.subr.bf16.mxu0 %v1392_v20  ;;  %574 = vmatprep.subr.bf16.mxu1 %v1394_v21  ;;  %v1445_v0 = vld [vmem:[#allocation5 + $0x174] ss:$8 sps:$4 sm:$0xff]   ;;  %v1440_v2 = vld [vmem:[#allocation5 + $0x70] ss:$8 sps:$4 sm:$0xff]   ;;  %v1448_v4 = vld [vmem:[#allocation5 + $0x64] ss:$8 sps:$4 sm:$0xff]  }
  0x31   :  { %1246 = vmatprep.mubr.msk.bf16.mxu0 %vm506_vm1, %v234_v53  ;;  %1248 = vmatprep.mubr.msk.bf16.mxu1 %vm506_vm1, %v234_v53  ;;  %v1443_v3 = vld [vmem:[#allocation5 + $0x170] ss:$8 sps:$4 sm:$0xff]   ;;  %v1451_v5 = vld [vmem:[#allocation5 + $0x164] ss:$8 sps:$4 sm:$0xff]   ;;  %v1446_v6 = vld [vmem:[#allocation5 + $0x60] ss:$8 sps:$4 sm:$0xff]  }
  0x32   :  { %v1449_v7 = vld [vmem:[#allocation5 + $0x160] ss:$8 sps:$4 sm:$0xff]   ;;  %v1454_v8 = vld [vmem:[#allocation5 + $0x54] ss:$8 sps:$4 sm:$0xff]   ;;  %v1452_v10 = vld [vmem:[#allocation5 + $0x50] ss:$8 sps:$4 sm:$0xff]  }
  0x33   :  { %534 = vmatpush1.bf16.msra.mxu0 %v1396_v22  ;;  %575 = vmatpush1.bf16.msra.mxu1 %v1397_v23  ;;  %v1457_v9 = vld [vmem:[#allocation5 + $0x154] ss:$8 sps:$4 sm:$0xff]   ;;  %v1455_v11 = vld [vmem:[#allocation5 + $0x150] ss:$8 sps:$4 sm:$0xff]   ;;  %v1460_v12 = vld [vmem:[#allocation5 + $0x44] ss:$8 sps:$4 sm:$0xff]  }
  0x34   :  { %535 = vmatprep.subr.bf16.mxu0 %v1398_v24  ;;  %576 = vmatprep.subr.bf16.mxu1 %v1400_v25  ;;  %v1463_v13 = vld [vmem:[#allocation5 + $0x144] ss:$8 sps:$4 sm:$0xff]   ;;  %v1458_v14 = vld [vmem:[#allocation5 + $0x40] ss:$8 sps:$4 sm:$0xff]   ;;  %v1466_v16 = vld [vmem:[#allocation5 + $0x34] ss:$8 sps:$4 sm:$0xff]  }
  0x35   :  { %v1461_v15 = vld [vmem:[#allocation5 + $0x140] ss:$8 sps:$4 sm:$0xff]   ;;  %v1469_v17 = vld [vmem:[#allocation5 + $0x134] ss:$8 sps:$4 sm:$0xff]   ;;  %v1464_v18 = vld [vmem:[#allocation5 + $0x30] ss:$8 sps:$4 sm:$0xff]  }
  0x36   :  { %v1467_v19 = vld [vmem:[#allocation5 + $0x130] ss:$8 sps:$4 sm:$0xff]   ;;  %v1472_v20 = vld [vmem:[#allocation5 + $0x24] ss:$8 sps:$4 sm:$0xff]   ;;  %v1470_v22 = vld [vmem:[#allocation5 + $0x20] ss:$8 sps:$4 sm:$0xff]  }
  0x37   :  { %536 = vmatpush1.bf16.msra.mxu0 %v1402_v26  ;;  %577 = vmatpush1.bf16.msra.mxu1 %v1403_v27  ;;  %v1475_v21 = vld [vmem:[#allocation5 + $0x124] ss:$8 sps:$4 sm:$0xff]   ;;  %v1473_v23 = vld [vmem:[#allocation5 + $0x120] ss:$8 sps:$4 sm:$0xff]   ;;  %v1478_v24 = vld [vmem:[#allocation5 + $0x14] ss:$8 sps:$4 sm:$0xff]  }
  0x38   :  { %537 = vmatprep.subr.bf16.mxu0 %v1404_v28  ;;  %578 = vmatprep.subr.bf16.mxu1 %v1406_v29  ;;  %v1481_v25 = vld [vmem:[#allocation5 + $0x114] ss:$8 sps:$4 sm:$0xff]   ;;  %v1476_v26 = vld [vmem:[#allocation5 + $0x10] ss:$8 sps:$4 sm:$0xff]   ;;  %v1484_v28 = vld [vmem:[#allocation5 + $0x4] ss:$8 sps:$4 sm:$0xff]  }
  0x39   :  { %v1479_v27 = vld [vmem:[#allocation5 + $0x110] ss:$8 sps:$4 sm:$0xff]   ;;  %v1487_v29 = vld [vmem:[#allocation5 + $0x104] ss:$8 sps:$4 sm:$0xff]   ;;  %v1482_v30 = vld [vmem:[#allocation5] ss:$8 sps:$4 sm:$0xff]  }
  0x3a   :  { %v1485_v31 = vld [vmem:[#allocation5 + $0x100] ss:$8 sps:$4 sm:$0xff]   ;;  %v1490_v32 = vld [vmem:[#allocation5 + $0xf4] ss:$8 sps:$4 sm:$0xff]   ;;  %v1491_v35 = vld [vmem:[#allocation5 + $0x1f0] ss:$8 sps:$4 sm:$0xff]  }
  0x3b   :  { %538 = vmatpush1.bf16.msra.mxu0 %v1408_v33  ;;  %579 = vmatpush1.bf16.msra.mxu1 %v1409_v34  ;;  %v1493_v33 = vld [vmem:[#allocation5 + $0x1f4] ss:$8 sps:$4 sm:$0xff]   ;;  %v1488_v34 = vld [vmem:[#allocation5 + $0xf0] ss:$8 sps:$4 sm:$0xff]   ;;  %v1496_v36 = vld [vmem:[#allocation5 + $0xe4] ss:$8 sps:$4 sm:$0xff]  }
  0x3c   :  { %1245 = vmatprep.subr.msk.bf16.mxu0 %vm510_vm0, %v1242_v38  ;;  %1247 = vmatprep.subr.msk.bf16.mxu1 %vm510_vm0, %v1244_v39  ;;  %v1499_v38 = vld [vmem:[#allocation5 + $0x1e4] ss:$8 sps:$4 sm:$0xff]   ;;  %v1494_v39 = vld [vmem:[#allocation5 + $0xe0] ss:$8 sps:$4 sm:$0xff]   ;;  %v1503_v44 = vld [vmem:[#allocation5 + $0x1d0] ss:$8 sps:$4 sm:$0xff]  }
  0x3d   :  { %v1508_v45 = vld [vmem:[#allocation5 + $0xc4] ss:$8 sps:$4 sm:$0xff]   ;;  %v1517_v50 = vld [vmem:[#allocation5 + $0x1b4] ss:$8 sps:$4 sm:$0xff]  }
  0x3e   :  { %v1520_v53 = vld [vmem:[#allocation5 + $0xa4] ss:$8 sps:$4 sm:$0xff]  }
  0x3f   :  { %546 = vmatpush2.bf16.msra.mxu0 %v512_v40  ;;  %587 = vmatpush2.bf16.msra.mxu1 %v518_v41  ;;  %v1497_v40 = vld [vmem:[#allocation5 + $0x1e0] ss:$8 sps:$4 sm:$0xff]   ;;  %v1502_v41 = vld [vmem:[#allocation5 + $0xd4] ss:$8 sps:$4 sm:$0xff]   ;;  %v1532_v61 = vld [vmem:[#allocation5 + $0x84] ss:$8 sps:$4 sm:$0xff]  }
  0x40   :  { %547 = vmatprep.subr.bf16.mxu0 %v1414_v42  ;;  %588 = vmatprep.subr.bf16.mxu1 %v1416_v43  ;;  %v1505_v42 = vld [vmem:[#allocation5 + $0x1d4] ss:$8 sps:$4 sm:$0xff]   ;;  %v1500_v43 = vld [vmem:[#allocation5 + $0xd0] ss:$8 sps:$4 sm:$0xff]  }
  0x43   :  { %548 = vmatpush2.bf16.msra.mxu0 %v1418_v46  ;;  %589 = vmatpush2.bf16.msra.mxu1 %v1419_v47  ;;  %v1511_v46 = vld [vmem:[#allocation5 + $0x1c4] ss:$8 sps:$4 sm:$0xff]   ;;  %v1506_v47 = vld [vmem:[#allocation5 + $0xc0] ss:$8 sps:$4 sm:$0xff]  }
  0x44   :  { %549 = vmatprep.subr.bf16.mxu0 %v1420_v48  ;;  %590 = vmatprep.subr.bf16.mxu1 %v1422_v49  ;;  %v1509_v48 = vld [vmem:[#allocation5 + $0x1c0] ss:$8 sps:$4 sm:$0xff]   ;;  %v1514_v49 = vld [vmem:[#allocation5 + $0xb4] ss:$8 sps:$4 sm:$0xff]  }
  0x47   :  { %550 = vmatpush2.bf16.msra.mxu0 %v1424_v51  ;;  %591 = vmatpush2.bf16.msra.mxu1 %v1425_v52  ;;  %v1512_v51 = vld [vmem:[#allocation5 + $0xb0] ss:$8 sps:$4 sm:$0xff]  }
  0x48   :  { %551 = vmatprep.subr.bf16.mxu0 %v1426_v54  ;;  %592 = vmatprep.subr.bf16.mxu1 %v1428_v55  ;;  %v1515_v52 = vld [vmem:[#allocation5 + $0x1b0] ss:$8 sps:$4 sm:$0xff]   ;;  %v1523_v54 = vld [vmem:[#allocation5 + $0x1a4] ss:$8 sps:$4 sm:$0xff]   ;;  %v1518_v55 = vld [vmem:[#allocation5 + $0xa0] ss:$8 sps:$4 sm:$0xff]  }
  0x4b   :  { %552 = vmatpush2.bf16.msra.mxu0 %v1430_v56  ;;  %593 = vmatpush2.bf16.msra.mxu1 %v1431_v57  ;;  %v1521_v56 = vld [vmem:[#allocation5 + $0x1a0] ss:$8 sps:$4 sm:$0xff]   ;;  %v1526_v57 = vld [vmem:[#allocation5 + $0x94] ss:$8 sps:$4 sm:$0xff]  }
  0x4c   :  { %553 = vmatprep.subr.bf16.mxu0 %v1432_v58  ;;  %594 = vmatprep.subr.bf16.mxu1 %v1434_v59  ;;  %v1529_v58 = vld [vmem:[#allocation5 + $0x194] ss:$8 sps:$4 sm:$0xff]   ;;  %v1524_v59 = vld [vmem:[#allocation5 + $0x90] ss:$8 sps:$4 sm:$0xff]  }
  0x4f   :  { %554 = vmatpush2.bf16.msra.mxu0 %v1436_v60  ;;  %595 = vmatpush2.bf16.msra.mxu1 %v1437_v62  ;;  %v1527_v60 = vld [vmem:[#allocation5 + $0x190] ss:$8 sps:$4 sm:$0xff]   ;;  %v1535_v62 = vld [vmem:[#allocation5 + $0x184] ss:$8 sps:$4 sm:$0xff]  }
  0x50   :  { %944 = vmatprep.subr.bf16.mxu0 %v1442_v63  ;;  %985 = vmatprep.subr.bf16.mxu1 %v1445_v0  ;;  %v1530_v63 = vld [vmem:[#allocation5 + $0x80] ss:$8 sps:$4 sm:$0xff]  }
  0x51   :  { %v1533_v0 = vld [vmem:[#allocation5 + $0x180] ss:$8 sps:$4 sm:$0xff]  }
  0x52   :  { %556 = vmatmul.mubr.bf16.vlgmr.msra.gmra.mxu0 %v233_v1  ;;  %597 = vmatmul.mubr.bf16.vlgmr.msra.gmra.mxu1 %v233_v1  ;;  %v1536_v1 = vld [vmem:[%s1756_s5 + $0x78] sm:$0xff]  }
  0x53   :  { %945 = vmatpush1.bf16.msra.mxu0 %v1440_v2  ;;  %986 = vmatpush1.bf16.msra.mxu1 %v1443_v3  ;;  %v238_v2 = vsub.s32 0, %v1675_v37  ;;  %v246_v3 = vsub.s32 2, %v1675_v37 }
  0x54   :  { %946 = vmatprep.subr.bf16.mxu0 %v1448_v4  ;;  %987 = vmatprep.subr.bf16.mxu1 %v1451_v5  ;;  %v202_v4 = vld [vmem:[%s1753_s2] sm:$0xf]  ;;  %v242_v5 = vsub.s32 1, %v1675_v37 }
  0x57   :  { %947 = vmatpush1.bf16.msra.mxu0 %v1446_v6  ;;  %988 = vmatpush1.bf16.msra.mxu1 %v1449_v7  ;;  %v250_v6 = vsub.s32 3, %v1675_v37  ;;  %v239_v7 = vrot.slane %v202_v4, %v238_v2 }
  0x58   :  { %948 = vmatprep.subr.bf16.mxu0 %v1454_v8  ;;  %989 = vmatprep.subr.bf16.mxu1 %v1457_v9  ;;  %v247_v8 = vrot.slane %v202_v4, %v246_v3  ;;  %v243_v9 = vrot.slane %v202_v4, %v242_v5 }
  0x5b   :  { %949 = vmatpush1.bf16.msra.mxu0 %v1452_v10  ;;  %990 = vmatpush1.bf16.msra.mxu1 %v1455_v11  ;;  %v251_v10 = vrot.slane %v202_v4, %v250_v6 }
  0x5c   :  { %950 = vmatprep.subr.bf16.mxu0 %v1460_v12  ;;  %991 = vmatprep.subr.bf16.mxu1 %v1463_v13 }
  0x5f   :  { %951 = vmatpush1.bf16.msra.mxu0 %v1458_v14  ;;  %992 = vmatpush1.bf16.msra.mxu1 %v1461_v15 }
  0x60   :  { %952 = vmatprep.subr.bf16.mxu0 %v1466_v16  ;;  %993 = vmatprep.subr.bf16.mxu1 %v1469_v17 }
  0x63   :  { %953 = vmatpush1.bf16.msra.mxu0 %v1464_v18  ;;  %994 = vmatpush1.bf16.msra.mxu1 %v1467_v19 }
  0x64   :  { %954 = vmatprep.subr.bf16.mxu0 %v1472_v20  ;;  %995 = vmatprep.subr.bf16.mxu1 %v1475_v21 }
  0x67   :  { %955 = vmatpush1.bf16.msra.mxu0 %v1470_v22  ;;  %996 = vmatpush1.bf16.msra.mxu1 %v1473_v23 }
  0x68   :  { %956 = vmatprep.subr.bf16.mxu0 %v1478_v24  ;;  %997 = vmatprep.subr.bf16.mxu1 %v1481_v25 }
  0x6b   :  { %957 = vmatpush1.bf16.msra.mxu0 %v1476_v26  ;;  %998 = vmatpush1.bf16.msra.mxu1 %v1479_v27 }
  0x6c   :  { %958 = vmatprep.subr.bf16.mxu0 %v1484_v28  ;;  %999 = vmatprep.subr.bf16.mxu1 %v1487_v29 }
  0x6f   :  { %959 = vmatpush1.bf16.msra.mxu0 %v1482_v30  ;;  %1000 = vmatpush1.bf16.msra.mxu1 %v1485_v31  ;;  %v1537_v30 = vld [vmem:[%s1756_s5 + $0x38] sm:$0xff]  }
  0x70   :  { %960 = vmatprep.subr.bf16.mxu0 %v1490_v32  ;;  %1001 = vmatprep.subr.bf16.mxu1 %v1493_v33  ;;  %v1538_v32 = vld [vmem:[%s1756_s5 + $0x70] sm:$0xff]  }
  0x71   :  { %v1539_v33 = vld [vmem:[%s1756_s5 + $0x30] sm:$0xff]  }
  0x73   :  { %961 = vmatpush2.bf16.msra.mxu0 %v1488_v34  ;;  %1002 = vmatpush2.bf16.msra.mxu1 %v1491_v35  ;;  %v1540_v34 = vld [vmem:[%s1756_s5 + $0x68] sm:$0xff]  }
  0x74   :  { %962 = vmatprep.subr.bf16.mxu0 %v1496_v36  ;;  %1003 = vmatprep.subr.bf16.mxu1 %v1499_v38  ;;  %v1541_v35 = vld [vmem:[%s1756_s5 + $0x28] sm:$0xff]   ;;  %v1542_v36 = vld [vmem:[%s1756_s5 + $0x60] sm:$0xff]  }
  0x75   :  { %v1543_v38 = vld [vmem:[%s1756_s5 + $0x20] sm:$0xff]  }
  0x77   :  { %963 = vmatpush2.bf16.msra.mxu0 %v1494_v39  ;;  %1004 = vmatpush2.bf16.msra.mxu1 %v1497_v40  ;;  %v1544_v39 = vld [vmem:[%s1756_s5 + $0x58] sm:$0xff]  }
  0x78   :  { %964 = vmatprep.subr.bf16.mxu0 %v1502_v41  ;;  %1005 = vmatprep.subr.bf16.mxu1 %v1505_v42  ;;  %v1545_v40 = vld [vmem:[%s1756_s5 + $0x18] sm:$0xff]   ;;  %v1546_v41 = vld [vmem:[%s1756_s5 + $0x50] sm:$0xff]  }
  0x79   :  { %v1547_v42 = vld [vmem:[%s1756_s5 + $0x10] sm:$0xff]  }
  0x7b   :  { %965 = vmatpush2.bf16.msra.mxu0 %v1500_v43  ;;  %1006 = vmatpush2.bf16.msra.mxu1 %v1503_v44  ;;  %v1548_v43 = vld [vmem:[%s1756_s5 + $0x48] sm:$0xff]  }
  0x7c   :  { %966 = vmatprep.subr.bf16.mxu0 %v1508_v45  ;;  %1007 = vmatprep.subr.bf16.mxu1 %v1511_v46  ;;  %v1549_v44 = vld [vmem:[%s1756_s5 + $0x8] sm:$0xff]   ;;  %v1550_v45 = vld [vmem:[%s1756_s5 + $0x40] sm:$0xff]  }
  0x7d   :  { %v1551_v46 = vld [vmem:[%s1756_s5] sm:$0xff]  }
  0x7f   :  { %967 = vmatpush2.bf16.msra.mxu0 %v1506_v47  ;;  %1008 = vmatpush2.bf16.msra.mxu1 %v1509_v48  ;;  %v203_v47 = vld [vmem:[%s1755_s4] sm:$0x3] }
  0x80   :  { %968 = vmatprep.subr.bf16.mxu0 %v1514_v49  ;;  %1009 = vmatprep.subr.bf16.mxu1 %v1517_v50  ;;  %v617_v48 = vrot.slane %v203_v47, %v238_v2  ;;  %v621_v49 = vrot.slane %v203_v47, %v242_v5  ;;  %v1313_v2 = vld [vmem:[%s1757_s6] ss:$0 sm:$0xff] }
  0x83   :  { %969 = vmatpush2.bf16.msra.mxu0 %v1512_v51  ;;  %1010 = vmatpush2.bf16.msra.mxu1 %v1515_v52 }
  0x84   :  { %970 = vmatprep.subr.bf16.mxu0 %v1520_v53  ;;  %1011 = vmatprep.subr.bf16.mxu1 %v1523_v54 }
  0x87   :  { %971 = vmatpush2.bf16.msra.mxu0 %v1518_v55  ;;  %1012 = vmatpush2.bf16.msra.mxu1 %v1521_v56 }
  0x88   :  { %972 = vmatprep.subr.bf16.mxu0 %v1526_v57  ;;  %1013 = vmatprep.subr.bf16.mxu1 %v1529_v58 }
  0x8b   :  { %973 = vmatpush2.bf16.msra.mxu0 %v1524_v59  ;;  %1014 = vmatpush2.bf16.msra.mxu1 %v1527_v60 }
  0x8c   :  { %974 = vmatprep.subr.bf16.mxu0 %v1532_v61  ;;  %1015 = vmatprep.subr.bf16.mxu1 %v1535_v62 }
  0x8f   :  { %975 = vmatpush2.bf16.msra.mxu0 %v1530_v63  ;;  %1016 = vmatpush2.bf16.msra.mxu1 %v1533_v0 }
  0x90   :  { %1330 = vmatprep.subr.bf16.mxu0 %v1536_v1 }
 0x112   :  { %v557_v11 = vpop.f32.mrf.mxu0  ;;  %v598_v12 = vpop.f32.mrf.mxu1 }
 0x113   :  { %v558_v13 = vadd.f32 %v557_v11, %v239_v7  ;;  %v599_v14 = vadd.f32 %v598_v12, %v247_v8 }
 0x114   :  { %v559_v15 = vpop.f32.mrf.mxu0  ;;  %v600_v16 = vpop.f32.mrf.mxu1 }
 0x115   :  { %v607_v17 = vmax.f32 %v599_v14, 0.0  ;;  %v560_v18 = vadd.f32 %v559_v15, %v243_v9  ;;  %v601_v19 = vadd.f32 %v600_v16, %v251_v10  ;;  %v605_v20 = vmax.f32 %v558_v13, 0.0 }
 0x116   :  { %v561_v21 = vpop.f32.mrf.mxu0  ;;  %v602_v22 = vpop.f32.mrf.mxu1 }
 0x117   :  { %v606_v23 = vmax.f32 %v560_v18, 0.0  ;;  %v608_v24 = vmax.f32 %v601_v19, 0.0  ;;  %v611_v25 = vpack.c.bf16 %v607_v17, %v607_v17  ;;  %v609_v31 = vpack.c.bf16 %v605_v20, %v605_v20 }
 0x118   :  { %v562_v26 = vpop.f32.mrf.mxu0  ;;  %v603_v27 = vpop.f32.mrf.mxu1 }
 0x119   :  { %v610_v28 = vpack.c.bf16 %v606_v23, %v606_v23  ;;  %v612_v29 = vpack.c.bf16 %v608_v24, %v608_v24 }
 0x11b   :  { %976 = vmatprep.mubr.bf16.mxu0 %v610_v28  ;;  %1017 = vmatprep.mubr.bf16.mxu1 %v612_v29 }
 0x11c   :  { %977 = vmatmul.mubr.bf16.vlgmr.msra.gmra.mxu0 %v609_v31  ;;  %1018 = vmatmul.mubr.bf16.vlgmr.msra.gmra.mxu1 %v611_v25 }
 0x11d   :  { %1331 = vmatpush3.bf16.msra.mxu0 %v1537_v30 }
 0x11e   :  { %1332 = vmatprep.subr.bf16.mxu0 %v1538_v32 }
 0x121   :  { %1333 = vmatpush3.bf16.msra.mxu0 %v1539_v33 }
 0x122   :  { %1334 = vmatprep.subr.bf16.mxu0 %v1540_v34 }
 0x125   :  { %1335 = vmatpush3.bf16.msra.mxu0 %v1541_v35 }
 0x126   :  { %1336 = vmatprep.subr.bf16.mxu0 %v1542_v36 }
 0x129   :  { %1337 = vmatpush3.bf16.msra.mxu0 %v1543_v38 }
 0x12a   :  { %1338 = vmatprep.subr.bf16.mxu0 %v1544_v39 }
 0x12d   :  { %1339 = vmatpush3.bf16.msra.mxu0 %v1545_v40 }
 0x12e   :  { %1340 = vmatprep.subr.bf16.mxu0 %v1546_v41 }
 0x131   :  { %1341 = vmatpush3.bf16.msra.mxu0 %v1547_v42 }
 0x132   :  { %1342 = vmatprep.subr.bf16.mxu0 %v1548_v43 }
 0x135   :  { %1343 = vmatpush3.bf16.msra.mxu0 %v1549_v44 }
 0x136   :  { %1344 = vmatprep.subr.bf16.mxu0 %v1550_v45 }
 0x139   :  { %1345 = vmatpush3.bf16.msra.mxu0 %v1551_v46 }
 0x1dc   :  { %v978_v50 = vpop.f32.mrf.mxu0  ;;  %v1019_v51 = vpop.f32.mrf.mxu1 }
 0x1dd   :  { %v979_v52 = vadd.f32 %v978_v50, %v617_v48 }
 0x1de   :  { %v980_v53 = vpop.f32.mrf.mxu0  ;;  %v1021_v54 = vpop.f32.mrf.mxu1 }
 0x1df   :  { %v1020_v55 = vadd.f32 %v1019_v51, %v979_v52  ;;  %v981_v56 = vadd.f32 %v980_v53, %v621_v49 }
 0x1e0   :  { %v982_v57 = vpop.f32.mrf.mxu0  ;;  %v1023_v58 = vpop.f32.mrf.mxu1 }
 0x1e1   :  { %v1022_v59 = vadd.f32 %v1021_v54, %v981_v56  ;;  %v1026_v60 = vmax.f32 %v1020_v55, 0.0 }
 0x1e2   :  { %v983_v61 = vpop.f32.mrf.mxu0  ;;  %v1024_v62 = vpop.f32.mrf.mxu1 }
 0x1e3   :  { %v1027_v63 = vmax.f32 %v1022_v59, 0.0  ;;  %v1028_v1 = vpack.c.bf16 %v1026_v60, %v1026_v60 }
 0x1e5   :  { %v1029_v0 = vpack.c.bf16 %v1027_v63, %v1027_v63 }
 0x1e7   :  { %1164 = vmatprep.mubr.bf16.mxu0 %v1029_v0 }
 0x1e8   :  { %1165 = vmatmul.mubr.bf16.vlgmr.msra.gmra.mxu0 %v1028_v1 }
 0x2a8   :  { %v1346_v37 = vpop.f32.mrf.mxu0 }
 0x2aa   :  { %v1347_v3 = vpop.f32.mrf.mxu0 }
 0x2ab   :  { %v1348_v4 = vadd.f32 %v1347_v3, %v1346_v37 }
 0x2ac   :  { %v1349_v5 = vpop.f32.mrf.mxu0 }
 0x2ad   :  { %v1167_v6 = vadd.f32 %v1348_v4, %v1313_v2 }
 0x2ae   :  { %v1350_v7 = vpop.f32.mrf.mxu0 }
 0x2af   :  { %v1172_v8 = vmax.f32 %v1167_v6, 0.0 }
 0x2b1   :  { %1174 = vst.msk [vmem:[#allocation7] sm:$0xff] %vm1173_vm2, %v1172_v8 }
 0x2b2   :  { %1179 = vsyncadd [#allocation4], 96  ;;  %s1626_s24 = smov [#allocation7]  }
 0x2b3   :  { %s1180_s25 = sshll.u32 %s1626_s24, 4  ;;  %s1181_s25 = int_to_ptr.vmem [resolvable:$true] %s1180_s25 }
 0x2b4   :  { %s1594_s26 = scalar_lea.vmem %s1181_s25, 32  ;;  %s1598_s27 = scalar_lea.vmem %s1181_s25, 128 }
 0x2b5   :  { %p1595_p10 = scmp.ne.s32.totalorder %s1181_s25, %s1594_s26  ;;  %p1599_p11 = scmp.lt.s32.totalorder %s1181_s25, %s1181_s25 }
 0x2b6   :  { %p1600_p12 = scmp.lt.s32.totalorder %s1598_s27, %s1594_s26 }
 0x2b8   :  { %p1601_p13 = por %p1600_p12, %p1599_p11 }
 0x2ba   :  { %p1602_p0 = pnand %p1601_p13, %p1595_p10 }
 0x2bc   :  { %1605 = shalt.err (!%p1602_p0)
}
 0x2bd   :  { %s1627_s6 = smov 32   ;;  %s1628_s28 = smov 2  }
 0x2be   :  { %1186 = dma.vmem_to_hbm [thread:$0]  %s1181_s25, 32, %s1758_s7, [#allocation4], %s1627_s6, %s1627_s6, %s1628_s28  }
 0x2bf   :  { %1618 = dma.done.wait [#allocation4], 128  }
 0x2c0   :  { %1619 = vsyncadd [#allocation4], 4294967168 }
 0x2c1   :  { %1190 = vsyncpa [#allocation3], 1 }
 0x2c2   :  { %1191 = vsyncpa [#allocation6], 1 }
 0x2c3   :  { %1192 = vsyncpa [#allocation4], 1 }

</bundles_post_ra>
